<compile_context>
chip_gen: v7x
topology: tpu7x:2x2x1
jax: 0.10.0
libtpu: 0.0.40
codegen_flags: <defaults>
</compile_context>

<pallas_src>
import functools

import jax
import jax.numpy as jnp
from jax import lax
from jax.experimental import pallas as pl
from jax.experimental.pallas import tpu as pltpu


def _cornernet_iou_loss_kernel(ind_ref, feat_ref, mask_ref, tgt_ref, out_ref,
                               pred_vmem, *, sigma, m_per_b):
    b = pl.program_id(0)
    base = b * m_per_b

    # --- In-VMEM gather -------------------------------------------------------
    # feat_ref is the full (HW, C) slab for this batch, already resident in VMEM
    # (single contiguous DMA issued by the BlockSpec pipeline).  Pick M rows with
    # dynamic sublane loads driven by the scalar-prefetched indices in SMEM.
    def gather_body(m, carry):
        idx = ind_ref[base + m]                                    # SMEM scalar read
        pred_vmem[pl.ds(m, 1), :] = feat_ref[pl.ds(idx, 1), :]     # (1, C) VMEM->VMEM
        return carry

    unroll = True if m_per_b <= 16 else 8
    lax.fori_loop(0, m_per_b, gather_body, 0, unroll=unroll)

    # --- CornerNet smooth-L1 ("IoU") loss, masked (matches _iou_loss) ----------
    pred = pred_vmem[...].astype(jnp.float32)      # (M, C)
    tgt = tgt_ref[...].astype(jnp.float32)         # (M, C)
    mask = mask_ref[...]                           # (M, 1) float32
    isnotnan = (~jnp.isnan(tgt)).astype(jnp.float32)
    m = mask * isnotnan                            # (M, C)
    regr = pred * m
    gt = tgt * m                                   # NOTE: 0*NaN = NaN, same as PyTorch
    abs_diff = jnp.abs(regr - gt)
    thr = 1.0 / (sigma ** 2)
    lt = (abs_diff <= thr).astype(jnp.float32)
    loss = lt * 0.5 * jnp.square(abs_diff * sigma) \
        + (abs_diff - 0.5 / (sigma ** 2)) * (1.0 - lt)             # (M, C)

    out_ref[...] = jnp.sum(loss, axis=0, keepdims=True)            # (1, C) partial sum


def cornernet_iou_loss(output_iou, target_iou, mask, ind, sigma=3):
    """output_iou: (B, C, H, W) NCHW;  target_iou: (B, M, C);
       mask: (B, M);  ind: (B, M) flat-HW indices.  Returns (C,) loss."""
    B, C, H, W = output_iou.shape
    HW = H * W
    M = ind.shape[1]

    # NCHW -> (B, HW, C): what _transpose_and_gather_feat does pre-gather.
    # For C == 1 (the IoU head) this is a free reshape; see TODO above for C > 1.
    feat = jnp.transpose(output_iou, (0, 2, 3, 1)).reshape(B, HW, C)
    ind_flat = ind.astype(jnp.int32).reshape(B * M)              # -> SMEM scalar prefetch
    mask3 = mask.astype(jnp.float32).reshape(B, M, 1)
    tgt3 = target_iou.reshape(B, M, C)

    kernel = functools.partial(_cornernet_iou_loss_kernel,
                               sigma=float(sigma), m_per_b=M)

    itemsize = int(jnp.dtype(feat.dtype).itemsize)
    cost = pl.CostEstimate(
        flops=int(12 * B * M * C),
        transcendentals=0,
        bytes_accessed=int(B * HW * C * itemsize           # feat slabs
                           + B * M * (C * 4 + 4 + 4)       # target, mask, ind
                           + B * C * 4))                   # partial sums out

    loss_partial = pl.pallas_call(
        kernel,
        out_shape=jax.ShapeDtypeStruct((B, 1, C), jnp.float32),
        grid_spec=pltpu.PrefetchScalarGridSpec(
            num_scalar_prefetch=1,                       # ind_flat -> SMEM
            grid=(B,),                                   # one step per batch
            in_specs=[
                pl.BlockSpec((None, HW, C), lambda b, ind: (b, 0, 0)),  # feat slab
                pl.BlockSpec((None, M, 1), lambda b, ind: (b, 0, 0)),   # mask (tiny)
                pl.BlockSpec((None, M, C), lambda b, ind: (b, 0, 0)),   # target (tiny)
            ],
            out_specs=pl.BlockSpec((None, 1, C), lambda b, ind: (b, 0, 0)),
            scratch_shapes=[
                pltpu.VMEM((M, C), feat.dtype),          # gathered pred rows
            ],
        ),
        compiler_params=pltpu.CompilerParams(dimension_semantics=("parallel",)),
        cost_estimate=cost,
    )(ind_flat, feat, mask3, tgt3)

    # mask-count normalization + batch reduction on the XLA side (tiny)
    num = mask.astype(jnp.float32).sum()
    return jnp.sum(loss_partial, axis=(0, 1)) / (num + 0.0001)       # (C,)


def _reference_loss(output_iou, target_iou, mask, ind, sigma=3):
    """Pure-JAX mirror of the PyTorch forward (for verification)."""
    B, C, H, W = output_iou.shape
    feat = jnp.transpose(output_iou, (0, 2, 3, 1)).reshape(B, H * W, C)
    pred = jnp.take_along_axis(feat, ind.astype(jnp.int32)[:, :, None], axis=1)  # (B,M,C)
    num = mask.astype(jnp.float32).sum()
    m = mask.astype(jnp.float32)[:, :, None] * (~jnp.isnan(target_iou)).astype(jnp.float32)
    regr = pred * m
    gt = target_iou * m
    abs_diff = jnp.abs(regr - gt)
    lt = (abs_diff <= 1.0 / sigma ** 2).astype(jnp.float32)
    loss = lt * 0.5 * jnp.square(abs_diff * sigma) + (abs_diff - 0.5 / sigma ** 2) * (1.0 - lt)
    loss = jnp.sum(loss, axis=(0, 1))   # (C,)
    return loss / (num + 0.0001)


if __name__ == "__main__":
    B, C, H, W, M = 2, 1, 16, 16, 8   # iou head has 1 channel; max_objects = 8
    key = jax.random.PRNGKey(0)
    k1, k2, k3, k4 = jax.random.split(key, 4)

    output_iou = jax.random.normal(k1, (B, C, H, W), dtype=jnp.float32)
    ind = jax.random.randint(k2, (B, M), 0, H * W, dtype=jnp.int32)
    mask = (jax.random.uniform(k3, (B, M)) > 0.3).astype(jnp.int32)
    # stand-in for get_iou output: clamped iou mapped to 2*(iou-0.5) in [-1, 1]
    target_iou = 2.0 * (jnp.clip(jax.random.uniform(k4, (B, M, C)), 0.0, 1.0) - 0.5)
    target_iou = target_iou.astype(jnp.float32)

    loss = cornernet_iou_loss(output_iou, target_iou, mask, ind)
    loss = jax.block_until_ready(loss)

    ref = _reference_loss(output_iou, target_iou, mask, ind)
    assert loss.shape == (C,)
    assert jnp.allclose(loss, ref, atol=1e-5, rtol=1e-5), (loss, ref)
    print("KERNEL_OK")
</pallas_src>

<mosaic_0001>
module attributes {stable_mosaic.version = 11 : i64} {
  func.func @_cornernet_iou_loss_kernel(%arg0: i32, %arg1: memref<16xi32, #tpu.memory_space<smem>>, %arg2: memref<1x256x1xf32, #tpu.memory_space<vmem>>, %arg3: memref<1x8x1xf32, #tpu.memory_space<vmem>>, %arg4: memref<1x8x1xf32, #tpu.memory_space<vmem>>, %arg5: memref<1x1x1xf32, #tpu.memory_space<vmem>>, %arg6: memref<8x1xf32, #tpu.memory_space<vmem>>) attributes {dimension_semantics = [#tpu.dimension_semantics<parallel>], iteration_bounds = array<i64: 2>, scalar_prefetch = 1 : i64, scratch_operands = 1 : i64, tpu.core_type = #tpu.core_type<tc>, window_params = [{transform_indices = @transform_0, window_bounds = array<i64: 1, 256, 1>}, {transform_indices = @transform_1, window_bounds = array<i64: 1, 8, 1>}, {transform_indices = @transform_2, window_bounds = array<i64: 1, 8, 1>}, {transform_indices = @transform_3, window_bounds = array<i64: 1, 1, 1>}]} {
    %c8_i32 = arith.constant 8 : i32
    %0 = arith.muli %arg0, %c8_i32 : i32
    %c0_i32 = arith.constant 0 : i32
    %1 = arith.addi %0, %c0_i32 : i32
    %2 = arith.index_cast %1 : i32 to index
    %3 = memref.load %arg1[%2] : memref<16xi32, #tpu.memory_space<smem>>
    %c0 = arith.constant 0 : index
    %4 = arith.index_cast %3 : i32 to index
    %c0_0 = arith.constant 0 : index
    %5 = vector.load %arg2[%c0, %4, %c0_0] : memref<1x256x1xf32, #tpu.memory_space<vmem>>, vector<1x1x1xf32>
    %6 = vector.shape_cast %5 : vector<1x1x1xf32> to vector<1x1xf32>
    %7 = arith.index_cast %c0_i32 : i32 to index
    %c0_1 = arith.constant 0 : index
    %8 = vector.load %arg6[%7, %c0_1] : memref<8x1xf32, #tpu.memory_space<vmem>>, vector<1x1xf32>
    tpu.vector_store %arg6[%7, %c0_1], %6 {strides = array<i32>} : memref<8x1xf32, #tpu.memory_space<vmem>>, vector<1x1xf32>,
    %c1_i32 = arith.constant 1 : i32
    %9 = arith.addi %0, %c1_i32 : i32
    %10 = arith.index_cast %9 : i32 to index
    %11 = memref.load %arg1[%10] : memref<16xi32, #tpu.memory_space<smem>>
    %c0_2 = arith.constant 0 : index
    %12 = arith.index_cast %11 : i32 to index
    %c0_3 = arith.constant 0 : index
    %13 = vector.load %arg2[%c0_2, %12, %c0_3] : memref<1x256x1xf32, #tpu.memory_space<vmem>>, vector<1x1x1xf32>
    %14 = vector.shape_cast %13 : vector<1x1x1xf32> to vector<1x1xf32>
    %15 = arith.index_cast %c1_i32 : i32 to index
    %c0_4 = arith.constant 0 : index
    %16 = vector.load %arg6[%15, %c0_4] : memref<8x1xf32, #tpu.memory_space<vmem>>, vector<1x1xf32>
    tpu.vector_store %arg6[%15, %c0_4], %14 {strides = array<i32>} : memref<8x1xf32, #tpu.memory_space<vmem>>, vector<1x1xf32>,
    %c2_i32 = arith.constant 2 : i32
    %17 = arith.addi %0, %c2_i32 : i32
    %18 = arith.index_cast %17 : i32 to index
    %19 = memref.load %arg1[%18] : memref<16xi32, #tpu.memory_space<smem>>
    %c0_5 = arith.constant 0 : index
    %20 = arith.index_cast %19 : i32 to index
    %c0_6 = arith.constant 0 : index
    %21 = vector.load %arg2[%c0_5, %20, %c0_6] : memref<1x256x1xf32, #tpu.memory_space<vmem>>, vector<1x1x1xf32>
    %22 = vector.shape_cast %21 : vector<1x1x1xf32> to vector<1x1xf32>
    %23 = arith.index_cast %c2_i32 : i32 to index
    %c0_7 = arith.constant 0 : index
    %24 = vector.load %arg6[%23, %c0_7] : memref<8x1xf32, #tpu.memory_space<vmem>>, vector<1x1xf32>
    tpu.vector_store %arg6[%23, %c0_7], %22 {strides = array<i32>} : memref<8x1xf32, #tpu.memory_space<vmem>>, vector<1x1xf32>,
    %c3_i32 = arith.constant 3 : i32
    %25 = arith.addi %0, %c3_i32 : i32
    %26 = arith.index_cast %25 : i32 to index
    %27 = memref.load %arg1[%26] : memref<16xi32, #tpu.memory_space<smem>>
    %c0_8 = arith.constant 0 : index
    %28 = arith.index_cast %27 : i32 to index
    %c0_9 = arith.constant 0 : index
    %29 = vector.load %arg2[%c0_8, %28, %c0_9] : memref<1x256x1xf32, #tpu.memory_space<vmem>>, vector<1x1x1xf32>
    %30 = vector.shape_cast %29 : vector<1x1x1xf32> to vector<1x1xf32>
    %31 = arith.index_cast %c3_i32 : i32 to index
    %c0_10 = arith.constant 0 : index
    %32 = vector.load %arg6[%31, %c0_10] : memref<8x1xf32, #tpu.memory_space<vmem>>, vector<1x1xf32>
    tpu.vector_store %arg6[%31, %c0_10], %30 {strides = array<i32>} : memref<8x1xf32, #tpu.memory_space<vmem>>, vector<1x1xf32>,
    %c4_i32 = arith.constant 4 : i32
    %33 = arith.addi %0, %c4_i32 : i32
    %34 = arith.index_cast %33 : i32 to index
    %35 = memref.load %arg1[%34] : memref<16xi32, #tpu.memory_space<smem>>
    %c0_11 = arith.constant 0 : index
    %36 = arith.index_cast %35 : i32 to index
    %c0_12 = arith.constant 0 : index
    %37 = vector.load %arg2[%c0_11, %36, %c0_12] : memref<1x256x1xf32, #tpu.memory_space<vmem>>, vector<1x1x1xf32>
    %38 = vector.shape_cast %37 : vector<1x1x1xf32> to vector<1x1xf32>
    %39 = arith.index_cast %c4_i32 : i32 to index
    %c0_13 = arith.constant 0 : index
    %40 = vector.load %arg6[%39, %c0_13] : memref<8x1xf32, #tpu.memory_space<vmem>>, vector<1x1xf32>
    tpu.vector_store %arg6[%39, %c0_13], %38 {strides = array<i32>} : memref<8x1xf32, #tpu.memory_space<vmem>>, vector<1x1xf32>,
    %c5_i32 = arith.constant 5 : i32
    %41 = arith.addi %0, %c5_i32 : i32
    %42 = arith.index_cast %41 : i32 to index
    %43 = memref.load %arg1[%42] : memref<16xi32, #tpu.memory_space<smem>>
    %c0_14 = arith.constant 0 : index
    %44 = arith.index_cast %43 : i32 to index
    %c0_15 = arith.constant 0 : index
    %45 = vector.load %arg2[%c0_14, %44, %c0_15] : memref<1x256x1xf32, #tpu.memory_space<vmem>>, vector<1x1x1xf32>
    %46 = vector.shape_cast %45 : vector<1x1x1xf32> to vector<1x1xf32>
    %47 = arith.index_cast %c5_i32 : i32 to index
    %c0_16 = arith.constant 0 : index
    %48 = vector.load %arg6[%47, %c0_16] : memref<8x1xf32, #tpu.memory_space<vmem>>, vector<1x1xf32>
    tpu.vector_store %arg6[%47, %c0_16], %46 {strides = array<i32>} : memref<8x1xf32, #tpu.memory_space<vmem>>, vector<1x1xf32>,
    %c6_i32 = arith.constant 6 : i32
    %49 = arith.addi %0, %c6_i32 : i32
    %50 = arith.index_cast %49 : i32 to index
    %51 = memref.load %arg1[%50] : memref<16xi32, #tpu.memory_space<smem>>
    %c0_17 = arith.constant 0 : index
    %52 = arith.index_cast %51 : i32 to index
    %c0_18 = arith.constant 0 : index
    %53 = vector.load %arg2[%c0_17, %52, %c0_18] : memref<1x256x1xf32, #tpu.memory_space<vmem>>, vector<1x1x1xf32>
    %54 = vector.shape_cast %53 : vector<1x1x1xf32> to vector<1x1xf32>
    %55 = arith.index_cast %c6_i32 : i32 to index
    %c0_19 = arith.constant 0 : index
    %56 = vector.load %arg6[%55, %c0_19] : memref<8x1xf32, #tpu.memory_space<vmem>>, vector<1x1xf32>
    tpu.vector_store %arg6[%55, %c0_19], %54 {strides = array<i32>} : memref<8x1xf32, #tpu.memory_space<vmem>>, vector<1x1xf32>,
    %c7_i32 = arith.constant 7 : i32
    %57 = arith.addi %0, %c7_i32 : i32
    %58 = arith.index_cast %57 : i32 to index
    %59 = memref.load %arg1[%58] : memref<16xi32, #tpu.memory_space<smem>>
    %c0_20 = arith.constant 0 : index
    %60 = arith.index_cast %59 : i32 to index
    %c0_21 = arith.constant 0 : index
    %61 = vector.load %arg2[%c0_20, %60, %c0_21] : memref<1x256x1xf32, #tpu.memory_space<vmem>>, vector<1x1x1xf32>
    %62 = vector.shape_cast %61 : vector<1x1x1xf32> to vector<1x1xf32>
    %63 = arith.index_cast %c7_i32 : i32 to index
    %c0_22 = arith.constant 0 : index
    %64 = vector.load %arg6[%63, %c0_22] : memref<8x1xf32, #tpu.memory_space<vmem>>, vector<1x1xf32>
    tpu.vector_store %arg6[%63, %c0_22], %62 {strides = array<i32>} : memref<8x1xf32, #tpu.memory_space<vmem>>, vector<1x1xf32>,
    %c8_i32_23 = arith.constant 8 : i32
    %c0_24 = arith.constant 0 : index
    %c0_25 = arith.constant 0 : index
    %65 = vector.load %arg6[%c0_24, %c0_25] : memref<8x1xf32, #tpu.memory_space<vmem>>, vector<8x1xf32>
    %c0_26 = arith.constant 0 : index
    %c0_27 = arith.constant 0 : index
    %c0_28 = arith.constant 0 : index
    %66 = vector.load %arg4[%c0_26, %c0_27, %c0_28] : memref<1x8x1xf32, #tpu.memory_space<vmem>>, vector<1x8x1xf32>
    %67 = vector.shape_cast %66 : vector<1x8x1xf32> to vector<8x1xf32>
    %c0_29 = arith.constant 0 : index
    %c0_30 = arith.constant 0 : index
    %c0_31 = arith.constant 0 : index
    %68 = vector.load %arg3[%c0_29, %c0_30, %c0_31] : memref<1x8x1xf32, #tpu.memory_space<vmem>>, vector<1x8x1xf32>
    %69 = vector.shape_cast %68 : vector<1x8x1xf32> to vector<8x1xf32>
    %70 = arith.cmpf one, %67, %67 : vector<8x1xf32>
    %cst = arith.constant dense<true> : vector<8x1xi1>
    %71 = arith.xori %70, %cst : vector<8x1xi1>
    %72 = arith.extui %71 : vector<8x1xi1> to vector<8x1xi32>
    %73 = arith.sitofp %72 : vector<8x1xi32> to vector<8x1xf32>
    %74 = arith.mulf %69, %73 : vector<8x1xf32>
    %75 = arith.mulf %65, %74 : vector<8x1xf32>
    %76 = arith.mulf %67, %74 : vector<8x1xf32>
    %77 = arith.subf %75, %76 : vector<8x1xf32>
    %78 = math.absf %77 : vector<8x1xf32>
    %cst_32 = arith.constant 0.111111112 : f32
    %79 = vector.broadcast %cst_32 : f32 to vector<8x1xf32>
    %80 = arith.cmpf ole, %78, %79 : vector<8x1xf32>
    %81 = arith.extui %80 : vector<8x1xi1> to vector<8x1xi32>
    %82 = arith.sitofp %81 : vector<8x1xi32> to vector<8x1xf32>
    %cst_33 = arith.constant 5.000000e-01 : f32
    %83 = vector.broadcast %cst_33 : f32 to vector<8x1xf32>
    %84 = arith.mulf %82, %83 : vector<8x1xf32>
    %cst_34 = arith.constant 3.000000e+00 : f32
    %85 = vector.broadcast %cst_34 : f32 to vector<8x1xf32>
    %86 = arith.mulf %78, %85 : vector<8x1xf32>
    %87 = arith.mulf %86, %86 : vector<8x1xf32>
    %88 = arith.mulf %84, %87 : vector<8x1xf32>
    %cst_35 = arith.constant 0.055555556 : f32
    %89 = vector.broadcast %cst_35 : f32 to vector<8x1xf32>
    %90 = arith.subf %78, %89 : vector<8x1xf32>
    %cst_36 = arith.constant 1.000000e+00 : f32
    %91 = vector.broadcast %cst_36 : f32 to vector<8x1xf32>
    %92 = arith.subf %91, %82 : vector<8x1xf32>
    %93 = arith.mulf %90, %92 : vector<8x1xf32>
    %94 = arith.addf %88, %93 : vector<8x1xf32>
    %cst_37 = arith.constant dense<0.000000e+00> : vector<1xf32>
    %95 = vector.multi_reduction <add>, %94, %cst_37 [0] : vector<8x1xf32> to vector<1xf32>
    %96 = vector.shape_cast %95 : vector<1xf32> to vector<1x1xf32>
    %c0_38 = arith.constant 0 : index
    %c0_39 = arith.constant 0 : index
    %c0_40 = arith.constant 0 : index
    %97 = vector.load %arg5[%c0_38, %c0_39, %c0_40] : memref<1x1x1xf32, #tpu.memory_space<vmem>>, vector<1x1x1xf32>
    %98 = vector.shape_cast %97 : vector<1x1x1xf32> to vector<1x1xf32>
    %99 = vector.shape_cast %96 : vector<1x1xf32> to vector<1x1x1xf32>
    tpu.vector_store %arg5[%c0_38, %c0_39, %c0_40], %99 {strides = array<i32>} : memref<1x1x1xf32, #tpu.memory_space<vmem>>, vector<1x1x1xf32>,
    return
  }
  func.func @transform_0(%arg0: i32, %arg1: memref<16xi32, #tpu.memory_space<smem>>) -> (i32, i32, i32) {
    %c0_i32 = arith.constant 0 : i32
    %c0_i32_0 = arith.constant 0 : i32
    %c0_i32_1 = arith.constant 0 : i32
    return %arg0, %c0_i32, %c0_i32_0 : i32, i32, i32
  }
  func.func @transform_1(%arg0: i32, %arg1: memref<16xi32, #tpu.memory_space<smem>>) -> (i32, i32, i32) {
    %c0_i32 = arith.constant 0 : i32
    %c0_i32_0 = arith.constant 0 : i32
    %c0_i32_1 = arith.constant 0 : i32
    return %arg0, %c0_i32, %c0_i32_0 : i32, i32, i32
  }
  func.func @transform_2(%arg0: i32, %arg1: memref<16xi32, #tpu.memory_space<smem>>) -> (i32, i32, i32) {
    %c0_i32 = arith.constant 0 : i32
    %c0_i32_0 = arith.constant 0 : i32
    %c0_i32_1 = arith.constant 0 : i32
    return %arg0, %c0_i32, %c0_i32_0 : i32, i32, i32
  }
  func.func @transform_3(%arg0: i32, %arg1: memref<16xi32, #tpu.memory_space<smem>>) -> (i32, i32, i32) {
    %c0_i32 = arith.constant 0 : i32
    %c0_i32_0 = arith.constant 0 : i32
    %c0_i32_1 = arith.constant 0 : i32
    return %arg0, %c0_i32, %c0_i32_0 : i32, i32, i32
  }
}

</mosaic_0001>

<bundles_post_ra>
// kernel: tpu_custom_call.1
= control target key start
LH: loop header
LB: loop body
LE: loop exit
PB: predicated region body
PF: predicated region fallthrough
CT: control target
= control target key end

     0   :  { %s497_s0 = inlined_call_operand.vmem [shape: s32[16], index: 0, kind: input, shape index: {}]   ;;  %s498_s1 = inlined_call_operand.vmem [shape: f32[2,256,1], index: 1, kind: input, shape index: {}]   ;;  %s499_s2 = inlined_call_operand.vmem [shape: f32[2,8,1], index: 2, kind: input, shape index: {}]   ;;  %s500_s3 = inlined_call_operand.vmem [shape: f32[2,8,1], index: 3, kind: input, shape index: {}]   ;;  %s501_s4 = inlined_call_operand.vmem [shape: f32[2,1,1], index: 4, kind: output, shape index: {}]  }
   0x1   :  { %s9_s17 = sshll.u32 %s497_s0, 4  ;;  %s10_s17 = int_to_ptr.vmem [resolvable:$true] %s9_s17 }
   0x2   :  { %s387_s18 = scalar_lea.vmem %s10_s17, 16  ;;  %p392_p1 = scmp.lt.s32.totalorder %s10_s17, %s10_s17 }
   0x3   :  { %p388_p0 = scmp.ne.s32.totalorder %s10_s17, %s387_s18  ;;  %p393_p2 = scmp.lt.s32.totalorder %s387_s18, %s387_s18 }
   0x5   :  { %p394_p3 = por %p393_p2, %p392_p1 }
   0x7   :  { %p395_p4 = pnand %p394_p3, %p388_p0 }
   0x9   :  { %398 = shalt.err (!%p395_p4)  }
   0xa   :  { %s409_s19 = smov [#allocation4]  }
   0xb   :  { %12 = dma.vmem_to_smem %s10_s17, 16, %s409_s19, [#allocation3] }
   0xc   :  { %403 = dma.done.wait [#allocation3], 16 }
   0xd   :  { %404 = vsyncadd [#allocation3], 4294967280 }
   0xe   :  { %14 = sfence }
   0xf   :  { %s440_s20 = smov 0  }
  0x10 LB: > { %s360_s0 = sadd.s32 4294967295, %s407_s20   ;;  %p364_p5 = scmp.ge.s32.totalorder %s407_s20, 1  ;;  %s407_s20 = sphi %s440_s20, %s20_s20  }
  0x11   : > { %p162_p6 = scmp.lt.s32.totalorder %s407_s20, 3 }
  0x13   : > { %p163_p7 = pnand %p364_p5, %p162_p6 }
  0x14   : > { %p192_p8 = scmp.lt.s32.totalorder (!%p163_p7), %s360_s0, 1  ;;  %s448_s21 = sshll.u32 (!%p163_p7), %s360_s0, 3  ;;  %vm212_vm0 = vcmask (!%p163_p7), 0   ;;  %vm410_vm2 = vmmov (!%p163_p7), 1   ;;  %v411_v10 = vmov (!%p163_p7), 0.0   ;;  %vm272_vm5 = vcmask (!%p163_p7), 7168  }
  0x15   : > { %166 = sbr.rel (%p163_p7) target bundleno = 77 (0x4d), region = 32  ;;  %s209_s22 = sld [smem:[#allocation4 + %s448_s21]] (!%p163_p7) }
  0x16   : > { %s214_s23 = sadd.s32 (!%p163_p7), 1, %s448_s21  ;;  %s219_s25 = sadd.s32 (!%p163_p7), 2, %s448_s21 }
  0x17   : > { %s215_s24 = sld [smem:[#allocation4 + %s214_s23]] (!%p163_p7)  ;;  %s224_s5 = sadd.s32 (!%p163_p7), 3, %s448_s21 }
  0x18   : > { %s220_s27 = sld [smem:[#allocation4 + %s219_s25]] (!%p163_p7)  ;;  %s229_s7 = sadd.s32 (!%p163_p7), 4, %s448_s21 }
  0x19   : > { %s225_s6 = sld [smem:[#allocation4 + %s224_s5]] (!%p163_p7)  ;;  %s234_s10 = sadd.s32 (!%p163_p7), 5, %s448_s21 }
  0x1a   : > { %s230_s9 = sld [smem:[#allocation4 + %s229_s7]] (!%p163_p7)  ;;  %s239_s11 = sadd.s32 (!%p163_p7), 6, %s448_s21 }
  0x1b   : > { %s235_s13 = sld [smem:[#allocation4 + %s234_s10]] (!%p163_p7)  ;;  %s244_s16 = sadd.s32 (!%p163_p7), 7, %s448_s21 }
  0x1c   : > { %s503_s0 = smov (!%p192_p8, %s360_s0), 1  ;;  %s240_s15 = sld [smem:[#allocation4 + %s239_s11]] }
  0x1d   : > { %s375_s26 = sshll.u32 %s503_s0, 8  ;;  %s367_s17 = sshll.u32 %s503_s0, 3 }
  0x1e   : > { %s459_s30 = scalar_lea.vmem %s498_s1, %s375_s26  ;;  %s245_s19 = sld [smem:[#allocation4 + %s244_s16]] }
  0x1f   : > { %s210_s8 = scalar_lea.vmem %s459_s30, %s209_s22  ;;  %s216_s12 = scalar_lea.vmem %s459_s30, %s215_s24 }
  0x20   : > { %v211_v0 = vld [vmem:[%s210_s8] sm:$0x1]  ;;  %s221_s14 = scalar_lea.vmem %s459_s30, %s220_s27  ;;  %s226_s18 = scalar_lea.vmem %s459_s30, %s225_s6 }
  0x21   : > { %213 = vst.msk [vmem:[#allocation2] sm:$0x1] %vm212_vm0, %v211_v0  ;;  %v217_v1 = vld [vmem:[%s216_s12] sm:$0x1]  ;;  %s231_s22 = scalar_lea.vmem %s459_s30, %s230_s9  ;;  %s204_s25 = scalar_lea.vmem %s500_s3, %s367_s17 }
  0x22   : > { %218 = vst.msk [vmem:[#allocation2 + $0x1] sm:$0x1] %vm212_vm0, %v217_v1  ;;  %v222_v2 = vld [vmem:[%s221_s14] sm:$0x1]  ;;  %s236_s26 = scalar_lea.vmem %s459_s30, %s235_s13  ;;  %s241_s21 = scalar_lea.vmem %s459_s30, %s240_s15 }
  0x23   : > { %223 = vst.msk [vmem:[#allocation2 + $0x2] sm:$0x1] %vm212_vm0, %v222_v2  ;;  %v227_v3 = vld [vmem:[%s226_s18] sm:$0x1]  ;;  %s200_s29 = scalar_lea.vmem %s499_s2, %s367_s17  ;;  %s207_s7 = scalar_lea.vmem %s501_s4, %s503_s0 }
  0x24   : > { %228 = vst.msk [vmem:[#allocation2 + $0x3] sm:$0x1] %vm212_vm0, %v227_v3  ;;  %v232_v4 = vld [vmem:[%s231_s22] sm:$0x1]  ;;  %s246_s5 = scalar_lea.vmem %s459_s30, %s245_s19 }
  0x25   : > { %233 = vst.msk [vmem:[#allocation2 + $0x4] sm:$0x1] %vm212_vm0, %v232_v4  ;;  %v250_v5 = vld [vmem:[%s204_s25] sm:$0xff] }
  0x26   : > { %v237_v6 = vld [vmem:[%s236_s26] sm:$0x1]  ;;  %vm252_vm1 = vcmp.ne.f32.partialorder %v250_v5, %v250_v5 }
  0x27   : > { %238 = vst.msk [vmem:[#allocation2 + $0x5] sm:$0x1] %vm212_vm0, %v237_v6  ;;  %v242_v7 = vld [vmem:[%s241_s21] sm:$0x1]  ;;  %vm253_vm3 = vmxor %vm252_vm1, %vm410_vm2 }
  0x28   : > { %243 = vst.msk [vmem:[#allocation2 + $0x6] sm:$0x1] %vm212_vm0, %v242_v7  ;;  %v247_v8 = vld [vmem:[%s246_s5] sm:$0x1]  ;;  %v370_v11 = vsel %vm253_vm3, 1.0, %v411_v10 }
  0x29   : > { %v251_v9 = vld [vmem:[%s200_s29] sm:$0xff]  ;;  %248 = vst.msk [vmem:[#allocation2 + $0x7] sm:$0x1] %vm212_vm0, %v247_v8 }
  0x2a   : > { %v256_v12 = vmul.f32 %v370_v11, %v251_v9 }
  0x2c   : > { %v258_v13 = vmul.f32 %v256_v12, %v250_v5 }
  0x30   : > { %v249_v14 = vld [vmem:[#allocation2] sm:$0xff] }
  0x31   : > { %v257_v15 = vmul.f32 %v256_v12, %v249_v14 }
  0x33   : > { %v259_v16 = vsub.f32 %v257_v15, %v258_v13 }
  0x35   : > { %v260_v17 = vand.u32 2147483647, %v259_v16 }
  0x37   : > { %vm261_vm4 = vcmp.le.f32.partialorder %v260_v17, 0.11111111  ;;  %v265_v18 = vmul.f32 3.0, %v260_v17  ;;  %v372_v22 = vadd.f32 -0.055555556, %v260_v17 }
  0x38   : > { %v371_v19 = vsel %vm261_vm4, 1.0, %v411_v10 }
  0x39   : > { %v264_v20 = vmul.f32 0.5, %v371_v19  ;;  %v266_v21 = vmul.f32 %v265_v18, %v265_v18  ;;  %v269_v23 = vsub.f32 1.0, %v371_v19 }
  0x3b   : > { %v267_v24 = vmul.f32 %v266_v21, %v264_v20  ;;  %v270_v25 = vmul.f32 %v372_v22, %v269_v23 }
  0x3d   : > { %v271_v26 = vadd.f32 %v270_v25, %v267_v24 }
  0x3f   : > { %v273_v27 = vsel %vm272_vm5, %v271_v26, 0.0 }
  0x40   : > { %v274_v28 = vrot.slane %v273_v27, 4 }
  0x42   : > { %v275_v29 = vadd.f32 %v274_v28, %v273_v27 }
  0x44   : > { %v276_v30 = vrot.slane %v275_v29, 2 }
  0x46   : > { %v277_v31 = vadd.f32 %v276_v30, %v275_v29 }
  0x48   : > { %v278_v32 = vrot.slane %v277_v31, 1 }
  0x4a   : > { %v279_v33 = vadd.f32 %v278_v32, %v277_v31 }
  0x4c   : > { %280 = vst.msk [vmem:[%s207_s7] sm:$0x1] %vm212_vm0, %v279_v33 }
  0x4d PF: > { %s20_s20 = sadd.s32 1, %s407_s20  }
  0x4e   : > { %p17_p9 = scmp.ge.s32.totalorder %s20_s20, 4  }
  0x50   :  { %19 = sbr.rel (!%p17_p9) target bundleno = 16 (0x10), region = 76 }

</bundles_post_ra>
